<compile_context>
chip_gen: v6e
topology: v6e:2x2x1
jax: 0.10.0
libtpu: 0.0.40
codegen_flags: <defaults>
</compile_context>

<pallas_src>
import functools

import jax
import jax.numpy as jnp
from jax.experimental import pallas as pl
from jax.experimental.pallas import tpu as pltpu

_LANES = 128


def _count_predictor_kernel(w1_ref, b1_ref, w2_ref, b2_ref, x_ref, o_ref, *, hidden):
    # x_ref: (tb, 128) VMEM tile, batch on lanes.  Weights are SMEM scalars.
    x = x_ref[...]
    acc = jnp.full(x.shape, b2_ref[0], dtype=jnp.float32)
    for j in range(hidden):  # hidden == 10, unrolled at trace time -> VPU ops only
        acc = acc + w2_ref[j] * jnp.maximum(w1_ref[j] * x + b1_ref[j], 0.0)
    # Dropout(p=0.25): eval/inference semantics -> identity (no mask, no scale).
    # TODO(synk): training-mode dropout would need pltpu.prng_seed/prng_random_bits.
    o_ref[...] = acc.astype(o_ref.dtype)


def count_predictor(x, w1, b1, w2, b2, *, block_rows=2048):
    """CountPredictor forward.  x: (B, 1) float32 -> (B, 1) float32.

    w1: (1, 10), b1: (10,), w2: (10, 1), b2: (1,)  (weights pre-transposed,
    i.e. stored as (in_features, out_features)).
    """
    B = x.shape[0]
    hidden = w1.shape[1]

    x_flat = x.reshape(B).astype(jnp.float32)

    # Lane-dense layout: batch on the 128-lane axis.
    rows = -(-B // _LANES)                      # ceil(B / 128)
    if rows <= block_rows:
        tb = rows                               # single block == full array dims
    else:
        tb = block_rows                         # multiple of 8 -> legal (8,128) tiling
    rows_pad = -(-rows // tb) * tb              # full blocks only -> unmasked stores
    b_pad = rows_pad * _LANES

    x2d = jnp.pad(x_flat, (0, b_pad - B)).reshape(rows_pad, _LANES)

    smem = pl.BlockSpec(memory_space=pltpu.SMEM)

    out2d = pl.pallas_call(
        functools.partial(_count_predictor_kernel, hidden=hidden),
        out_shape=jax.ShapeDtypeStruct((rows_pad, _LANES), jnp.float32),
        grid=(rows_pad // tb,),
        in_specs=[
            smem,                                            # w1 (hidden,)
            smem,                                            # b1 (hidden,)
            smem,                                            # w2 (hidden,)
            smem,                                            # b2 (1,)
            pl.BlockSpec((tb, _LANES), lambda i: (i, 0)),    # x tile
        ],
        out_specs=pl.BlockSpec((tb, _LANES), lambda i: (i, 0)),
        compiler_params=pltpu.CompilerParams(
            dimension_semantics=("parallel",),
        ),
    )(
        w1.reshape(hidden).astype(jnp.float32),
        b1.reshape(hidden).astype(jnp.float32),
        w2.reshape(hidden).astype(jnp.float32),
        b2.reshape(1).astype(jnp.float32),
        x2d,
    )

    # Drop the batch padding and restore (B, 1).
    return out2d.reshape(b_pad)[:B].reshape(B, 1)


def _torch_like_linear_init(key, in_features, out_features):
    """Deterministic init matching nn.Linear's U(-1/sqrt(fan_in), 1/sqrt(fan_in))."""
    kw, kb = jax.random.split(key)
    bound = 1.0 / (in_features ** 0.5)
    # Stored as (in_features, out_features) == W^T relative to PyTorch.
    w = jax.random.uniform(kw, (in_features, out_features), jnp.float32, -bound, bound)
    b = jax.random.uniform(kb, (out_features,), jnp.float32, -bound, bound)
    return w, b


if __name__ == "__main__":
    key = jax.random.PRNGKey(0)
    k_x, k_fc1, k_fc2 = jax.random.split(key, 3)

    B = 8  # small batch
    x = jax.random.normal(k_x, (B, 1), dtype=jnp.float32)

    w1, b1 = _torch_like_linear_init(k_fc1, 1, 10)   # fc1: Linear(1, 10)
    w2, b2 = _torch_like_linear_init(k_fc2, 10, 1)   # fc2: Linear(10, 1)

    out = count_predictor(x, w1, b1, w2, b2)
    out = jax.block_until_ready(out)

    # Pure-JAX reference (eval-mode dropout == identity).
    ref = jnp.maximum(x @ w1 + b1, 0.0) @ w2 + b2
    assert out.shape == (B, 1)
    assert jnp.allclose(out, ref, atol=1e-5, rtol=1e-5)

    # Exercise the multi-block (grid > 1) streaming path with a small tile.
    B2 = 2000
    x2 = jax.random.normal(k_x, (B2, 1), dtype=jnp.float32)
    out2 = jax.block_until_ready(count_predictor(x2, w1, b1, w2, b2, block_rows=8))
    ref2 = jnp.maximum(x2 @ w1 + b1, 0.0) @ w2 + b2
    assert out2.shape == (B2, 1)
    assert jnp.allclose(out2, ref2, atol=1e-5, rtol=1e-5)

    # Default (large-block) path on a batch that needs padding.
    B3 = 777
    x3 = jax.random.normal(k_x, (B3, 1), dtype=jnp.float32)
    out3 = jax.block_until_ready(count_predictor(x3, w1, b1, w2, b2))
    ref3 = jnp.maximum(x3 @ w1 + b1, 0.0) @ w2 + b2
    assert out3.shape == (B3, 1)
    assert jnp.allclose(out3, ref3, atol=1e-5, rtol=1e-5)

    print("KERNEL_OK")
</pallas_src>

<mosaic_0001>
module attributes {stable_mosaic.version = 11 : i64} {
  func.func @_count_predictor_kernel(%arg0: i32, %arg1: memref<10xf32, #tpu.memory_space<smem>>, %arg2: memref<10xf32, #tpu.memory_space<smem>>, %arg3: memref<10xf32, #tpu.memory_space<smem>>, %arg4: memref<1xf32, #tpu.memory_space<smem>>, %arg5: memref<1x128xf32, #tpu.memory_space<vmem>>, %arg6: memref<1x128xf32, #tpu.memory_space<vmem>>) attributes {dimension_semantics = [#tpu.dimension_semantics<parallel>], iteration_bounds = array<i64: 1>, scalar_prefetch = 0 : i64, scratch_operands = 0 : i64, tpu.core_type = #tpu.core_type<tc>, window_params = [{transform_indices = @transform_0, window_bounds = array<i64: 10>}, {transform_indices = @transform_1, window_bounds = array<i64: 10>}, {transform_indices = @transform_2, window_bounds = array<i64: 10>}, {transform_indices = @transform_3, window_bounds = array<i64: 1>}, {transform_indices = @transform_4, window_bounds = array<i64: 1, 128>}, {transform_indices = @transform_5, window_bounds = array<i64: 1, 128>}]} {
    %c0 = arith.constant 0 : index
    %c0_0 = arith.constant 0 : index
    %0 = vector.load %arg5[%c0, %c0_0] : memref<1x128xf32, #tpu.memory_space<vmem>>, vector<1x128xf32>
    %c0_1 = arith.constant 0 : index
    %1 = memref.load %arg4[%c0_1] : memref<1xf32, #tpu.memory_space<smem>>
    %2 = vector.broadcast %1 : f32 to vector<1x128xf32>
    %c0_2 = arith.constant 0 : index
    %3 = memref.load %arg3[%c0_2] : memref<10xf32, #tpu.memory_space<smem>>
    %c0_3 = arith.constant 0 : index
    %4 = memref.load %arg1[%c0_3] : memref<10xf32, #tpu.memory_space<smem>>
    %5 = vector.broadcast %4 : f32 to vector<1x128xf32>
    %6 = arith.mulf %5, %0 : vector<1x128xf32>
    %c0_4 = arith.constant 0 : index
    %7 = memref.load %arg2[%c0_4] : memref<10xf32, #tpu.memory_space<smem>>
    %8 = vector.broadcast %7 : f32 to vector<1x128xf32>
    %9 = arith.addf %6, %8 : vector<1x128xf32>
    %cst = arith.constant 0.000000e+00 : f32
    %10 = vector.broadcast %cst : f32 to vector<1x128xf32>
    %11 = arith.maximumf %9, %10 : vector<1x128xf32>
    %12 = vector.broadcast %3 : f32 to vector<1x128xf32>
    %13 = arith.mulf %12, %11 : vector<1x128xf32>
    %14 = arith.addf %2, %13 : vector<1x128xf32>
    %c1 = arith.constant 1 : index
    %15 = memref.load %arg3[%c1] : memref<10xf32, #tpu.memory_space<smem>>
    %c1_5 = arith.constant 1 : index
    %16 = memref.load %arg1[%c1_5] : memref<10xf32, #tpu.memory_space<smem>>
    %17 = vector.broadcast %16 : f32 to vector<1x128xf32>
    %18 = arith.mulf %17, %0 : vector<1x128xf32>
    %c1_6 = arith.constant 1 : index
    %19 = memref.load %arg2[%c1_6] : memref<10xf32, #tpu.memory_space<smem>>
    %20 = vector.broadcast %19 : f32 to vector<1x128xf32>
    %21 = arith.addf %18, %20 : vector<1x128xf32>
    %cst_7 = arith.constant 0.000000e+00 : f32
    %22 = vector.broadcast %cst_7 : f32 to vector<1x128xf32>
    %23 = arith.maximumf %21, %22 : vector<1x128xf32>
    %24 = vector.broadcast %15 : f32 to vector<1x128xf32>
    %25 = arith.mulf %24, %23 : vector<1x128xf32>
    %26 = arith.addf %14, %25 : vector<1x128xf32>
    %c2 = arith.constant 2 : index
    %27 = memref.load %arg3[%c2] : memref<10xf32, #tpu.memory_space<smem>>
    %c2_8 = arith.constant 2 : index
    %28 = memref.load %arg1[%c2_8] : memref<10xf32, #tpu.memory_space<smem>>
    %29 = vector.broadcast %28 : f32 to vector<1x128xf32>
    %30 = arith.mulf %29, %0 : vector<1x128xf32>
    %c2_9 = arith.constant 2 : index
    %31 = memref.load %arg2[%c2_9] : memref<10xf32, #tpu.memory_space<smem>>
    %32 = vector.broadcast %31 : f32 to vector<1x128xf32>
    %33 = arith.addf %30, %32 : vector<1x128xf32>
    %cst_10 = arith.constant 0.000000e+00 : f32
    %34 = vector.broadcast %cst_10 : f32 to vector<1x128xf32>
    %35 = arith.maximumf %33, %34 : vector<1x128xf32>
    %36 = vector.broadcast %27 : f32 to vector<1x128xf32>
    %37 = arith.mulf %36, %35 : vector<1x128xf32>
    %38 = arith.addf %26, %37 : vector<1x128xf32>
    %c3 = arith.constant 3 : index
    %39 = memref.load %arg3[%c3] : memref<10xf32, #tpu.memory_space<smem>>
    %c3_11 = arith.constant 3 : index
    %40 = memref.load %arg1[%c3_11] : memref<10xf32, #tpu.memory_space<smem>>
    %41 = vector.broadcast %40 : f32 to vector<1x128xf32>
    %42 = arith.mulf %41, %0 : vector<1x128xf32>
    %c3_12 = arith.constant 3 : index
    %43 = memref.load %arg2[%c3_12] : memref<10xf32, #tpu.memory_space<smem>>
    %44 = vector.broadcast %43 : f32 to vector<1x128xf32>
    %45 = arith.addf %42, %44 : vector<1x128xf32>
    %cst_13 = arith.constant 0.000000e+00 : f32
    %46 = vector.broadcast %cst_13 : f32 to vector<1x128xf32>
    %47 = arith.maximumf %45, %46 : vector<1x128xf32>
    %48 = vector.broadcast %39 : f32 to vector<1x128xf32>
    %49 = arith.mulf %48, %47 : vector<1x128xf32>
    %50 = arith.addf %38, %49 : vector<1x128xf32>
    %c4 = arith.constant 4 : index
    %51 = memref.load %arg3[%c4] : memref<10xf32, #tpu.memory_space<smem>>
    %c4_14 = arith.constant 4 : index
    %52 = memref.load %arg1[%c4_14] : memref<10xf32, #tpu.memory_space<smem>>
    %53 = vector.broadcast %52 : f32 to vector<1x128xf32>
    %54 = arith.mulf %53, %0 : vector<1x128xf32>
    %c4_15 = arith.constant 4 : index
    %55 = memref.load %arg2[%c4_15] : memref<10xf32, #tpu.memory_space<smem>>
    %56 = vector.broadcast %55 : f32 to vector<1x128xf32>
    %57 = arith.addf %54, %56 : vector<1x128xf32>
    %cst_16 = arith.constant 0.000000e+00 : f32
    %58 = vector.broadcast %cst_16 : f32 to vector<1x128xf32>
    %59 = arith.maximumf %57, %58 : vector<1x128xf32>
    %60 = vector.broadcast %51 : f32 to vector<1x128xf32>
    %61 = arith.mulf %60, %59 : vector<1x128xf32>
    %62 = arith.addf %50, %61 : vector<1x128xf32>
    %c5 = arith.constant 5 : index
    %63 = memref.load %arg3[%c5] : memref<10xf32, #tpu.memory_space<smem>>
    %c5_17 = arith.constant 5 : index
    %64 = memref.load %arg1[%c5_17] : memref<10xf32, #tpu.memory_space<smem>>
    %65 = vector.broadcast %64 : f32 to vector<1x128xf32>
    %66 = arith.mulf %65, %0 : vector<1x128xf32>
    %c5_18 = arith.constant 5 : index
    %67 = memref.load %arg2[%c5_18] : memref<10xf32, #tpu.memory_space<smem>>
    %68 = vector.broadcast %67 : f32 to vector<1x128xf32>
    %69 = arith.addf %66, %68 : vector<1x128xf32>
    %cst_19 = arith.constant 0.000000e+00 : f32
    %70 = vector.broadcast %cst_19 : f32 to vector<1x128xf32>
    %71 = arith.maximumf %69, %70 : vector<1x128xf32>
    %72 = vector.broadcast %63 : f32 to vector<1x128xf32>
    %73 = arith.mulf %72, %71 : vector<1x128xf32>
    %74 = arith.addf %62, %73 : vector<1x128xf32>
    %c6 = arith.constant 6 : index
    %75 = memref.load %arg3[%c6] : memref<10xf32, #tpu.memory_space<smem>>
    %c6_20 = arith.constant 6 : index
    %76 = memref.load %arg1[%c6_20] : memref<10xf32, #tpu.memory_space<smem>>
    %77 = vector.broadcast %76 : f32 to vector<1x128xf32>
    %78 = arith.mulf %77, %0 : vector<1x128xf32>
    %c6_21 = arith.constant 6 : index
    %79 = memref.load %arg2[%c6_21] : memref<10xf32, #tpu.memory_space<smem>>
    %80 = vector.broadcast %79 : f32 to vector<1x128xf32>
    %81 = arith.addf %78, %80 : vector<1x128xf32>
    %cst_22 = arith.constant 0.000000e+00 : f32
    %82 = vector.broadcast %cst_22 : f32 to vector<1x128xf32>
    %83 = arith.maximumf %81, %82 : vector<1x128xf32>
    %84 = vector.broadcast %75 : f32 to vector<1x128xf32>
    %85 = arith.mulf %84, %83 : vector<1x128xf32>
    %86 = arith.addf %74, %85 : vector<1x128xf32>
    %c7 = arith.constant 7 : index
    %87 = memref.load %arg3[%c7] : memref<10xf32, #tpu.memory_space<smem>>
    %c7_23 = arith.constant 7 : index
    %88 = memref.load %arg1[%c7_23] : memref<10xf32, #tpu.memory_space<smem>>
    %89 = vector.broadcast %88 : f32 to vector<1x128xf32>
    %90 = arith.mulf %89, %0 : vector<1x128xf32>
    %c7_24 = arith.constant 7 : index
    %91 = memref.load %arg2[%c7_24] : memref<10xf32, #tpu.memory_space<smem>>
    %92 = vector.broadcast %91 : f32 to vector<1x128xf32>
    %93 = arith.addf %90, %92 : vector<1x128xf32>
    %cst_25 = arith.constant 0.000000e+00 : f32
    %94 = vector.broadcast %cst_25 : f32 to vector<1x128xf32>
    %95 = arith.maximumf %93, %94 : vector<1x128xf32>
    %96 = vector.broadcast %87 : f32 to vector<1x128xf32>
    %97 = arith.mulf %96, %95 : vector<1x128xf32>
    %98 = arith.addf %86, %97 : vector<1x128xf32>
    %c8 = arith.constant 8 : index
    %99 = memref.load %arg3[%c8] : memref<10xf32, #tpu.memory_space<smem>>
    %c8_26 = arith.constant 8 : index
    %100 = memref.load %arg1[%c8_26] : memref<10xf32, #tpu.memory_space<smem>>
    %101 = vector.broadcast %100 : f32 to vector<1x128xf32>
    %102 = arith.mulf %101, %0 : vector<1x128xf32>
    %c8_27 = arith.constant 8 : index
    %103 = memref.load %arg2[%c8_27] : memref<10xf32, #tpu.memory_space<smem>>
    %104 = vector.broadcast %103 : f32 to vector<1x128xf32>
    %105 = arith.addf %102, %104 : vector<1x128xf32>
    %cst_28 = arith.constant 0.000000e+00 : f32
    %106 = vector.broadcast %cst_28 : f32 to vector<1x128xf32>
    %107 = arith.maximumf %105, %106 : vector<1x128xf32>
    %108 = vector.broadcast %99 : f32 to vector<1x128xf32>
    %109 = arith.mulf %108, %107 : vector<1x128xf32>
    %110 = arith.addf %98, %109 : vector<1x128xf32>
    %c9 = arith.constant 9 : index
    %111 = memref.load %arg3[%c9] : memref<10xf32, #tpu.memory_space<smem>>
    %c9_29 = arith.constant 9 : index
    %112 = memref.load %arg1[%c9_29] : memref<10xf32, #tpu.memory_space<smem>>
    %113 = vector.broadcast %112 : f32 to vector<1x128xf32>
    %114 = arith.mulf %113, %0 : vector<1x128xf32>
    %c9_30 = arith.constant 9 : index
    %115 = memref.load %arg2[%c9_30] : memref<10xf32, #tpu.memory_space<smem>>
    %116 = vector.broadcast %115 : f32 to vector<1x128xf32>
    %117 = arith.addf %114, %116 : vector<1x128xf32>
    %cst_31 = arith.constant 0.000000e+00 : f32
    %118 = vector.broadcast %cst_31 : f32 to vector<1x128xf32>
    %119 = arith.maximumf %117, %118 : vector<1x128xf32>
    %120 = vector.broadcast %111 : f32 to vector<1x128xf32>
    %121 = arith.mulf %120, %119 : vector<1x128xf32>
    %122 = arith.addf %110, %121 : vector<1x128xf32>
    %c0_32 = arith.constant 0 : index
    %c0_33 = arith.constant 0 : index
    %123 = vector.load %arg6[%c0_32, %c0_33] : memref<1x128xf32, #tpu.memory_space<vmem>>, vector<1x128xf32>
    tpu.vector_store %arg6[%c0_32, %c0_33], %122 {strides = array<i32>} : memref<1x128xf32, #tpu.memory_space<vmem>>, vector<1x128xf32>,
    return
  }
  func.func @transform_0(%arg0: i32) -> i32 {
    %c0_i32 = arith.constant 0 : i32
    %c0_i32_0 = arith.constant 0 : i32
    return %c0_i32 : i32
  }
  func.func @transform_1(%arg0: i32) -> i32 {
    %c0_i32 = arith.constant 0 : i32
    %c0_i32_0 = arith.constant 0 : i32
    return %c0_i32 : i32
  }
  func.func @transform_2(%arg0: i32) -> i32 {
    %c0_i32 = arith.constant 0 : i32
    %c0_i32_0 = arith.constant 0 : i32
    return %c0_i32 : i32
  }
  func.func @transform_3(%arg0: i32) -> i32 {
    %c0_i32 = arith.constant 0 : i32
    %c0_i32_0 = arith.constant 0 : i32
    return %c0_i32 : i32
  }
  func.func @transform_4(%arg0: i32) -> (i32, i32) {
    %c0_i32 = arith.constant 0 : i32
    %c0_i32_0 = arith.constant 0 : i32
    return %arg0, %c0_i32 : i32, i32
  }
  func.func @transform_5(%arg0: i32) -> (i32, i32) {
    %c0_i32 = arith.constant 0 : i32
    %c0_i32_0 = arith.constant 0 : i32
    return %arg0, %c0_i32 : i32, i32
  }
}

</mosaic_0001>

<bundles_post_ra>
// kernel: tpu_custom_call.1
= control target key start
LH: loop header
LB: loop body
LE: loop exit
PB: predicated region body
PF: predicated region fallthrough
CT: control target
= control target key end

     0   :  { %11 = vsyncpa [#allocation5], 0  ;;  %s366_s0 = inlined_call_operand.vmem [shape: f32[10], index: 0, kind: input, shape index: {}]   ;;  %s367_s1 = inlined_call_operand.vmem [shape: f32[10], index: 1, kind: input, shape index: {}]   ;;  %s368_s2 = inlined_call_operand.vmem [shape: f32[10], index: 2, kind: input, shape index: {}]   ;;  %s369_s3 = inlined_call_operand.<no memory space> [shape: f32[1], index: 3, kind: input, shape index: {}]   ;;  %s370_s4 = inlined_call_operand.vmem [shape: f32[1,128], index: 4, kind: input, shape index: {}]   ;;  %s371_s5 = inlined_call_operand.hbm [shape: f32[1,128], index: 5, kind: output, shape index: {}]  }
   0x1   :  { %12 = vsyncpa [#allocation7], 0  ;;  %s30_s20 = sshll.u32 %s367_s1, 4  ;;  %s31_s20 = int_to_ptr.vmem [resolvable:$true] %s30_s20 }
   0x2   :  { %13 = vsyncpa [#allocation4], 0  ;;  %s20_s23 = sshll.u32 %s366_s0, 4  ;;  %s219_s24 = scalar_lea.vmem %s31_s20, 16  ;;  %s21_s23 = int_to_ptr.vmem [resolvable:$true] %s20_s23 }
   0x3   :  { %p220_p0 = scmp.ne.s32.totalorder %s31_s20, %s219_s24  ;;  %p224_p1 = scmp.lt.s32.totalorder %s31_s20, %s31_s20 }
   0x4   :  { %p225_p2 = scmp.lt.s32.totalorder %s219_s24, %s219_s24 }
   0x6   :  { %p226_p3 = por %p225_p2, %p224_p1 }
   0x8   :  { %p227_p4 = pnand %p226_p3, %p220_p0 }
   0xa   :  { %230 = shalt.err (!%p227_p4)
}
   0xb   :  { %s281_s25 = smov [#allocation6]   ;;  %s231_s26 = scalar_lea.vmem %s21_s23, 16 }
   0xc   :  { %33 = dma.vmem_to_smem %s31_s20, 16, %s281_s25, [#allocation7]  }
   0xd   :  { %p232_p5 = scmp.ne.s32.totalorder %s21_s23, %s231_s26  ;;  %p236_p6 = scmp.lt.s32.totalorder %s21_s23, %s21_s23 }
   0xe   :  { %p237_p7 = scmp.lt.s32.totalorder %s231_s26, %s231_s26 }
  0x10   :  { %p238_p8 = por %p237_p7, %p236_p6 }
  0x12   :  { %p239_p9 = pnand %p238_p8, %p232_p5 }
  0x14   :  { %242 = shalt.err (!%p239_p9)
}
  0x15   :  { %s282_s1 = smov [#allocation3]   ;;  %s40_s28 = sshll.u32 %s368_s2, 4  ;;  %s41_s28 = int_to_ptr.vmem [resolvable:$true] %s40_s28 }
  0x16   :  { %23 = dma.vmem_to_smem %s21_s23, 16, %s282_s1, [#allocation5]  }
  0x17   :  { %s243_s29 = scalar_lea.vmem %s41_s28, 16  ;;  %p248_p11 = scmp.lt.s32.totalorder %s41_s28, %s41_s28 }
  0x18   :  { %p244_p10 = scmp.ne.s32.totalorder %s41_s28, %s243_s29  ;;  %p249_p12 = scmp.lt.s32.totalorder %s243_s29, %s243_s29 }
  0x1a   :  { %p250_p13 = por %p249_p12, %p248_p11 }
  0x1c   :  { %p251_p0 = pnand %p250_p13, %p244_p10 }
  0x1e   :  { %254 = shalt.err (!%p251_p0)
}
  0x1f   :  { %s283_s30 = smov [#allocation8]  }
  0x20   :  { %43 = dma.vmem_to_smem %s41_s28, 16, %s283_s30, [#allocation7]  }
  0x21   :  { %275 = dma.done.wait [#allocation5], 16  }
  0x22   :  { %276 = vsyncadd [#allocation5], 4294967280 }
  0x23   :  { %277 = dma.done.wait [#allocation7], 32  }
  0x24   :  { %278 = vsyncadd [#allocation7], 4294967264 }
  0x25   :  { %57 = sfence }
  0x26   :  { %s62_s6 = sld [smem:[#allocation3]]  ;;  %v327_v0 = vld [vmem:[%s370_s4] sm:$0x1]  ;;  %v60_v10 = vstv %s369_s3  ;;  %s284_s2 = smov [#allocation9]  }
  0x27   :  { %s65_s7 = sld [smem:[#allocation6]]  ;;  %s178_s10 = sshll.u32 %s284_s2, 4  ;;  %s179_s10 = int_to_ptr.vmem [resolvable:$true] %s178_s10 }
  0x28   :  { %s61_s8 = sld [smem:[#allocation8]]  ;;  %p260_p2 = scmp.lt.s32.totalorder %s179_s10, %s179_s10 }
  0x29   :  { %s189_s9 = sld [smem:[#allocation3 + $0x1]] }
  0x2a   :  { %s190_s11 = sld [smem:[#allocation6 + $0x1]] }
  0x2b   :  { %s329_s12 = sld [smem:[#allocation8 + $0x1]] }
  0x2c   :  { %v63_v1 = vstv %s62_s6  ;;  %s192_s13 = sld [smem:[#allocation3 + $0x2]] }
  0x2d   :  { %v64_v2 = vmul.f32 %v63_v1, %v327_v0  ;;  %v66_v3 = vstv %s65_s7  ;;  %s193_s14 = sld [smem:[#allocation6 + $0x2]] }
  0x2e   :  { %s332_s15 = sld [smem:[#allocation8 + $0x2]]  ;;  %v69_v6 = vstv %s61_s8 }
  0x2f   :  { %v67_v4 = vadd.f32 %v66_v3, %v64_v2  ;;  %v74_v5 = vstv %s189_s9  ;;  %s195_s16 = sld [smem:[#allocation3 + $0x3]] }
  0x30   :  { %v75_v7 = vmul.f32 %v74_v5, %v327_v0  ;;  %v77_v8 = vstv %s190_s11  ;;  %s196_s4 = sld [smem:[#allocation6 + $0x3]]  ;;  %s255_s11 = scalar_lea.vmem %s179_s10, 16 }
  0x31   :  { %v68_v9 = vmax.f32 %v67_v4, 0.0  ;;  %s335_s17 = sld [smem:[#allocation8 + $0x3]]  ;;  %v80_v14 = vstv %s329_s12  ;;  %p256_p1 = scmp.ne.s32.totalorder %s179_s10, %s255_s11 }
  0x32   :  { %v78_v11 = vadd.f32 %v77_v8, %v75_v7  ;;  %v85_v12 = vstv %s192_s13  ;;  %s198_s20 = sld [smem:[#allocation3 + $0x4]]  ;;  %s259_s12 = scalar_lea.vmem %s179_s10, 32 }
  0x33   :  { %v70_v13 = vmul.f32 %v69_v6, %v68_v9  ;;  %v86_v15 = vmul.f32 %v85_v12, %v327_v0  ;;  %v88_v16 = vstv %s193_s14  ;;  %s199_s21 = sld [smem:[#allocation6 + $0x4]]  ;;  %p261_p3 = scmp.lt.s32.totalorder %s259_s12, %s255_s11 }
  0x34   :  { %v79_v17 = vmax.f32 %v78_v11, 0.0  ;;  %s342_s22 = sld [smem:[#allocation8 + $0x4]]  ;;  %v91_v22 = vstv %s332_s15 }
  0x35   :  { %v71_v18 = vadd.f32 %v70_v13, %v60_v10  ;;  %v89_v19 = vadd.f32 %v88_v16, %v86_v15  ;;  %v96_v20 = vstv %s195_s16  ;;  %s201_s23 = sld [smem:[#allocation3 + $0x5]]  ;;  %p262_p4 = por %p261_p3, %p260_p2 }
  0x36   :  { %v81_v21 = vmul.f32 %v80_v14, %v79_v17  ;;  %v97_v23 = vmul.f32 %v96_v20, %v327_v0  ;;  %v99_v24 = vstv %s196_s4  ;;  %s202_s3 = sld [smem:[#allocation6 + $0x5]] }
  0x37   :  { %v90_v25 = vmax.f32 %v89_v19, 0.0  ;;  %s346_s24 = sld [smem:[#allocation8 + $0x5]]  ;;  %v102_v30 = vstv %s335_s17  ;;  %p263_p5 = pnand %p262_p4, %p256_p1 }
  0x38   :  { %v82_v26 = vadd.f32 %v81_v21, %v71_v18  ;;  %v100_v27 = vadd.f32 %v99_v24, %v97_v23  ;;  %v107_v28 = vstv %s198_s20  ;;  %s204_s25 = sld [smem:[#allocation3 + $0x6]] }
  0x39   :  { %v92_v29 = vmul.f32 %v91_v22, %v90_v25  ;;  %v108_v31 = vmul.f32 %v107_v28, %v327_v0  ;;  %v110_v32 = vstv %s199_s21  ;;  %s205_s26 = sld [smem:[#allocation6 + $0x6]] }
  0x3a   :  { %v101_v33 = vmax.f32 %v100_v27, 0.0  ;;  %s350_s1 = sld [smem:[#allocation8 + $0x6]]  ;;  %v113_v38 = vstv %s342_s22 }
  0x3b   :  { %v93_v34 = vadd.f32 %v92_v29, %v82_v26  ;;  %v111_v35 = vadd.f32 %v110_v32, %v108_v31  ;;  %v118_v36 = vstv %s201_s23  ;;  %s207_s0 = sld [smem:[#allocation3 + $0x7]] }
  0x3c   :  { %v103_v37 = vmul.f32 %v102_v30, %v101_v33  ;;  %v119_v39 = vmul.f32 %v118_v36, %v327_v0  ;;  %v121_v40 = vstv %s202_s3  ;;  %s208_s27 = sld [smem:[#allocation6 + $0x7]] }
  0x3d   :  { %v112_v41 = vmax.f32 %v111_v35, 0.0  ;;  %s354_s28 = sld [smem:[#allocation8 + $0x7]]  ;;  %v124_v46 = vstv %s346_s24 }
  0x3e   :  { %v104_v42 = vadd.f32 %v103_v37, %v93_v34  ;;  %v122_v43 = vadd.f32 %v121_v40, %v119_v39  ;;  %v129_v44 = vstv %s204_s25  ;;  %s210_s29 = sld [smem:[#allocation3 + $0x8]] }
  0x3f   :  { %v114_v45 = vmul.f32 %v113_v38, %v112_v41  ;;  %v130_v47 = vmul.f32 %v129_v44, %v327_v0  ;;  %v132_v48 = vstv %s205_s26  ;;  %s211_s30 = sld [smem:[#allocation6 + $0x8]] }
  0x40   :  { %v123_v49 = vmax.f32 %v122_v43, 0.0  ;;  %s209_s6 = sld [smem:[#allocation8 + $0x8]]  ;;  %v135_v54 = vstv %s350_s1 }
  0x41   :  { %v115_v50 = vadd.f32 %v114_v45, %v104_v42  ;;  %v133_v51 = vadd.f32 %v132_v48, %v130_v47  ;;  %v140_v52 = vstv %s207_s0  ;;  %s213_s7 = sld [smem:[#allocation3 + $0x9]] }
  0x42   :  { %v125_v53 = vmul.f32 %v124_v46, %v123_v49  ;;  %v141_v55 = vmul.f32 %v140_v52, %v327_v0  ;;  %v143_v56 = vstv %s208_s27  ;;  %s214_s8 = sld [smem:[#allocation6 + $0x9]] }
  0x43   :  { %v134_v57 = vmax.f32 %v133_v51, 0.0  ;;  %s212_s9 = sld [smem:[#allocation8 + $0x9]]  ;;  %v146_v62 = vstv %s354_s28 }
  0x44   :  { %v126_v58 = vadd.f32 %v125_v53, %v115_v50  ;;  %v144_v59 = vadd.f32 %v143_v56, %v141_v55  ;;  %v151_v60 = vstv %s210_s29 }
  0x45   :  { %v136_v61 = vmul.f32 %v135_v54, %v134_v57  ;;  %v152_v63 = vmul.f32 %v151_v60, %v327_v0  ;;  %v154_v1 = vstv %s211_s30 }
  0x46   :  { %v145_v2 = vmax.f32 %v144_v59, 0.0  ;;  %v157_v7 = vstv %s209_s6 }
  0x47   :  { %v137_v3 = vadd.f32 %v136_v61, %v126_v58  ;;  %v155_v4 = vadd.f32 %v154_v1, %v152_v63  ;;  %v162_v5 = vstv %s213_s7 }
  0x48   :  { %v147_v6 = vmul.f32 %v146_v62, %v145_v2  ;;  %v163_v8 = vmul.f32 %v162_v5, %v327_v0  ;;  %v165_v9 = vstv %s214_s8 }
  0x49   :  { %v156_v10 = vmax.f32 %v155_v4, 0.0  ;;  %v168_v14 = vstv %s212_s9 }
  0x4a   :  { %v148_v11 = vadd.f32 %v147_v6, %v137_v3  ;;  %v166_v12 = vadd.f32 %v165_v9, %v163_v8 }
  0x4b   :  { %v158_v13 = vmul.f32 %v157_v7, %v156_v10 }
  0x4c   :  { %v167_v15 = vmax.f32 %v166_v12, 0.0 }
  0x4d   :  { %v159_v16 = vadd.f32 %v158_v13, %v148_v11 }
  0x4e   :  { %v169_v17 = vmul.f32 %v168_v14, %v167_v15 }
  0x50   :  { %v170_v18 = vadd.f32 %v169_v17, %v159_v16 }
  0x52   :  { %171 = vst [vmem:[#allocation9] sm:$0x1] %v170_v18 }
  0x53   :  { %266 = shalt.err (!%p263_p5)
}
  0x54   :  { %181 = dma.vmem_to_hbm [thread:$0]  %s179_s10, 16, %s371_s5, [#allocation4]  }
  0x55   :  { %279 = dma.done.wait [#allocation4], 16  }
  0x56   :  { %280 = vsyncadd [#allocation4], 4294967280 }
  0x57   :  { %185 = vsyncpa [#allocation4], 1 }
  0x58   :  { %186 = vsyncpa [#allocation5], 1 }
  0x59   :  { %187 = vsyncpa [#allocation7], 1 }

</bundles_post_ra>
